<compile_context>
chip_gen: v6e
topology: v6e:2x2x1
jax: 0.10.0
libtpu: 0.0.40
codegen_flags: <defaults>
</compile_context>

<pallas_src>
import jax
import jax.numpy as jnp
from jax.experimental import pallas as pl
from jax.experimental.pallas import tpu as pltpu

_DP_CH = 3     # xyz relative-coordinate channels ('dp')
_FJ_OFF = 8    # sublane-aligned row offset of the fj block inside the VMEM scratch


def _round_up(x, m):
    return (x + m - 1) // m * m


def _resblock_kernel(dp_ref, fj_ref, w_ref, b_ref, id_ref, o_ref, x_ref):
    """One (batch, N-tile) grid step.

    dp_ref : (1, K, 3, TN)       bf16  relative neighbor coords, channels-first
    fj_ref : (1, K, C, TN)       bf16  gathered neighbor features, channels-first
    w_ref  : (CO_PAD, CIN_PAD)   f32   fused 1x1-conv weight (transposed, row-scattered)
    b_ref  : (C, 1)              f32   fused bias
    id_ref : (1, C, TN)          bf16  residual identity (native channels-first layout)
    o_ref  : (1, C, TN)          f32   output (channels-first -> no wrapper transpose)
    x_ref  : (CIN_PAD, TN)       f32   VMEM scratch: zero-padded matmul operand
    """
    k_neighbors = dp_ref.shape[1]
    c = id_ref.shape[1]

    # Pad the (tiny) channel dim in VMEM, not in HBM: zero the scratch once per step,
    # then drop the dp / fj rows into aligned sublane offsets before each MXU matmul.
    x_ref[...] = jnp.zeros(x_ref.shape, x_ref.dtype)

    acc = None
    for k in range(k_neighbors):                      # K is small & static -> unrolled
        x_ref[0:_DP_CH, :] = dp_ref[0, k].astype(jnp.float32)
        x_ref[_FJ_OFF:_FJ_OFF + c, :] = fj_ref[0, k].astype(jnp.float32)
        # Three activation-free 1x1 convs folded into one matmul; channels-first so the
        # result lands as (C_out, TN) with N on the lanes (no transpose anywhere).
        h = jnp.dot(w_ref[...], x_ref[...], preferred_element_type=jnp.float32)
        # reduction='max' over the neighbor axis as a running max: only (CO_PAD, TN)
        # f32 stays live (no K*TN*C_pad intermediate).
        acc = h if acc is None else jnp.maximum(acc, h)

    out = acc[:c, :] + b_ref[...] + id_ref[0].astype(jnp.float32)
    # TODO(synk): ResBlock default act_args=None is ill-defined in the reference
    #             (create_act(None)); standard PointNeXt configs use ReLU -> use ReLU.
    o_ref[0] = jnp.maximum(out, 0.0).astype(o_ref.dtype)


def init_resblock_params(key, in_channels, expansion=1):
    """Deterministic synthetic parameters (Conv2d 1x1 weights stored as (Cin, Cout))."""
    c_in0 = in_channels + _DP_CH                     # CHANNEL_MAP['dp_fj']
    mid = in_channels * expansion
    dims = [(c_in0, in_channels), (in_channels, mid), (mid, in_channels)]
    keys = jax.random.split(key, 2 * len(dims))
    params = {}
    for i, (ci, co) in enumerate(dims):
        scale = 1.0 / jnp.sqrt(jnp.float32(ci))
        params[f"w{i + 1}"] = scale * jax.random.normal(keys[2 * i], (ci, co), jnp.float32)
        params[f"b{i + 1}"] = 0.01 * jax.random.normal(keys[2 * i + 1], (1, co), jnp.float32)
    return params


def _ball_query_idx(p, radius, nsample):
    """First-`nsample` in-radius neighbors (each point is inside its own radius), padded
    with the first hit. Returns (B, N, nsample) int32.
    TODO(synk): O(B*N^2) dense distance + sort; replace with a grid-hash / masked top_k
                neighbor search at realistic point counts."""
    _, N, _ = p.shape
    d2 = jnp.sum((p[:, :, None, :] - p[:, None, :, :]) ** 2, axis=-1)     # (B, N, N)
    within = d2 < (radius * radius)
    order = jnp.where(within, jnp.arange(N)[None, None, :], N)
    sorted_idx = jnp.sort(order, axis=-1)[:, :, :nsample]
    first = sorted_idx[:, :, :1]
    return jnp.where(sorted_idx >= N, first, sorted_idx).astype(jnp.int32)


def _vmem_budget():
    """Generation-aware VMEM sizing (v5e/v6e: 128 MiB physical, v7x: 64 MiB)."""
    phys = 64 * 1024 * 1024
    try:
        cap = getattr(pltpu.get_tpu_info(), "vmem_capacity_bytes", None)
        if cap:
            phys = int(cap)
    except Exception:
        pass
    budget = phys // 2                               # target for blocks + scratch
    limit = min(phys * 3 // 4, 96 * 1024 * 1024)     # scoped VMEM limit, with headroom
    return budget, limit


def _choose_tile_n(n, batch, k, c, cin_pad, co_pad, budget_bytes):
    """Largest lane-dense (multiple-of-128) N tile whose double-buffered blocks plus the
    f32 scratch fit the VMEM budget; keeps >=2 grid programs for v7x's two TensorCores."""
    s16 = lambda d: _round_up(d, 16)                 # bf16 sublane padding in VMEM
    s8 = lambda d: _round_up(d, 8)                   # f32 sublane padding in VMEM
    per_col = (2 * k * s16(_DP_CH) * 2               # dp block, double buffered (bf16)
               + 2 * k * s16(c) * 2                  # fj block, double buffered (bf16)
               + 2 * s16(c) * 2                      # identity block (bf16)
               + 2 * s8(c) * 4                       # output block (f32)
               + cin_pad * 4)                        # in-kernel f32 scratch (single)
    fixed = 2 * (s8(co_pad) * cin_pad * 4 + s8(c) * 128 * 4) + (1 << 20)  # weights/bias/slack
    cap = max(128, ((budget_bytes - fixed) // per_col) // 128 * 128)
    tile = min(cap, 2048, _round_up(n, 128))
    if batch < 2 and n > 128:
        tile = min(tile, _round_up(pl.cdiv(n, 2), 128))   # megacore: >=2 N-tiles when B==1
    return tile


def resblock_forward(p, f, params, *, radius=0.25, nsample=8):
    """p: (B, N, 3) f32, f: (B, C, N) f32 -> [p, f_out] with f_out: (B, C, N) f32."""
    B, N, _ = p.shape
    C = f.shape[1]
    K = nsample
    CO_PAD = _round_up(C, 8)
    CIN_PAD = _round_up(_FJ_OFF + C, 8)

    # ---------------- grouping: ball query + gather + relative coords (XLA glue) ----------------
    # TODO(synk): fj/dp still materialize (B, K, *, N) in HBM (~K-fold duplication of f);
    #             an in-kernel gather (scalar-prefetched idx + per-batch f slab resident in
    #             VMEM) would cut the dominant HBM traffic by ~K.
    idx = _ball_query_idx(p, radius, K)                           # (B, N, K)
    idx_t = jnp.transpose(idx, (0, 2, 1))                         # (B, K, N)
    p_cf = jnp.transpose(p, (0, 2, 1))                            # (B, 3, N) channels-first
    p_nb = jax.vmap(lambda pb, ib: pb[:, ib])(p_cf, idx_t)        # (B, 3, K, N)
    dp = jnp.transpose(p_nb, (0, 2, 1, 3)) - p_cf[:, None, :, :]  # (B, K, 3, N)
    f_nb = jax.vmap(lambda fb, ib: fb[:, ib])(f, idx_t)           # (B, C, K, N)
    fj = jnp.transpose(f_nb, (0, 2, 1, 3))                        # (B, K, C, N)

    # ------------- fold the three activation-free 1x1 convs into one affine map -------------
    w_fused = params["w1"] @ params["w2"] @ params["w3"]          # (3+C, C)
    b_fused = (params["b1"] @ params["w2"] @ params["w3"]
               + params["b2"] @ params["w3"] + params["b3"])      # (1, C)
    w_t = w_fused.T.astype(jnp.float32)                           # (C, 3+C)
    w_pad = jnp.zeros((CO_PAD, CIN_PAD), jnp.float32)
    w_pad = w_pad.at[:C, 0:_DP_CH].set(w_t[:, :_DP_CH])
    w_pad = w_pad.at[:C, _FJ_OFF:_FJ_OFF + C].set(w_t[:, _DP_CH:])
    b_col = b_fused.T.astype(jnp.float32)                         # (C, 1)

    # ------------- tiling: N on lanes, channel dims stay UNPADDED in HBM, bf16 operands -------------
    budget, vmem_limit = _vmem_budget()
    TILE_N = _choose_tile_n(N, B, K, C, CIN_PAD, CO_PAD, budget)
    N_pad = _round_up(N, TILE_N)
    pad_n4 = ((0, 0), (0, 0), (0, 0), (0, N_pad - N))
    dp_h = jnp.pad(dp, pad_n4).astype(jnp.bfloat16)               # (B, K, 3, N_pad)
    fj_h = jnp.pad(fj, pad_n4).astype(jnp.bfloat16)               # (B, K, C, N_pad)
    id_h = jnp.pad(f, ((0, 0), (0, 0), (0, N_pad - N))).astype(jnp.bfloat16)   # (B, C, N_pad)

    # ---------------- Pallas hot path ----------------
    grid = (B, N_pad // TILE_N)
    out_pad = pl.pallas_call(
        _resblock_kernel,
        out_shape=jax.ShapeDtypeStruct((B, C, N_pad), f.dtype),
        grid=grid,
        in_specs=[
            pl.BlockSpec((1, K, _DP_CH, TILE_N), lambda b, n: (b, 0, 0, n)),
            pl.BlockSpec((1, K, C, TILE_N), lambda b, n: (b, 0, 0, n)),
            pl.BlockSpec((CO_PAD, CIN_PAD), lambda b, n: (0, 0)),
            pl.BlockSpec((C, 1), lambda b, n: (0, 0)),
            pl.BlockSpec((1, C, TILE_N), lambda b, n: (b, 0, n)),
        ],
        out_specs=pl.BlockSpec((1, C, TILE_N), lambda b, n: (b, 0, n)),
        scratch_shapes=[pltpu.VMEM((CIN_PAD, TILE_N), jnp.float32)],
        compiler_params=pltpu.CompilerParams(
            dimension_semantics=("parallel", "parallel"),
            vmem_limit_bytes=int(vmem_limit)),
    )(dp_h, fj_h, w_pad, b_col, id_h)

    return [p, out_pad[:, :, :N]]


def resblock_reference(p, f, params, *, radius=0.25, nsample=8):
    """Pure-JAX f32 reference mirroring the PyTorch module (three sequential affine 1x1
    convs, max over neighbors, residual add, ReLU)."""
    idx = _ball_query_idx(p, radius, nsample)                     # (B, N, K)
    p_nb = jax.vmap(lambda pb, ib: pb[ib])(p, idx)                # (B, N, K, 3)
    dp = p_nb - p[:, :, None, :]
    f_cl = jnp.transpose(f, (0, 2, 1))                            # (B, N, C)
    fj = jax.vmap(lambda fb, ib: fb[ib])(f_cl, idx)               # (B, N, K, C)
    x = jnp.concatenate([dp, fj], axis=-1)                        # (B, N, K, 3+C)
    x = x @ params["w1"] + params["b1"]
    x = x @ params["w2"] + params["b2"]
    x = x @ params["w3"] + params["b3"]
    pooled = jnp.max(x, axis=2)                                   # max over neighbors
    out = jnp.maximum(pooled + f_cl, 0.0)
    return jnp.transpose(out, (0, 2, 1))                          # (B, C, N)


if __name__ == "__main__":
    B, C, N = 2, 4, 16          # batch, in_channels, number of points
    nsample, radius = 8, 0.25   # ball-query params (ResBlock default group dict is NAME-only)

    key = jax.random.PRNGKey(0)
    kp, kf, kw = jax.random.split(key, 3)
    p = jax.random.uniform(kp, (B, N, 3), dtype=jnp.float32)      # points in the unit cube
    f = jax.random.normal(kf, (B, C, N), dtype=jnp.float32)       # features (B, C, N)

    params = init_resblock_params(kw, C, expansion=1)

    p_out, f_out = resblock_forward(p, f, params, radius=radius, nsample=nsample)
    jax.block_until_ready(f_out)
    assert f_out.shape == (B, C, N)

    ref = resblock_reference(p, f, params, radius=radius, nsample=nsample)
    max_err = jnp.max(jnp.abs(f_out - ref))
    assert jnp.allclose(f_out, ref, atol=1e-1, rtol=1e-1), f"max |err| = {max_err}"
    print("KERNEL_OK")
</pallas_src>

<mosaic_0001>
module attributes {stable_mosaic.version = 11 : i64} {
  func.func @_resblock_kernel(%arg0: i32, %arg1: i32, %arg2: memref<1x8x3x128xbf16, #tpu.memory_space<vmem>>, %arg3: memref<1x8x4x128xbf16, #tpu.memory_space<vmem>>, %arg4: memref<8x16xf32, #tpu.memory_space<vmem>>, %arg5: memref<4x1xf32, #tpu.memory_space<vmem>>, %arg6: memref<1x4x128xbf16, #tpu.memory_space<vmem>>, %arg7: memref<1x4x128xf32, #tpu.memory_space<vmem>>, %arg8: memref<16x128xf32, #tpu.memory_space<vmem>>) attributes {dimension_semantics = [#tpu.dimension_semantics<parallel>, #tpu.dimension_semantics<parallel>], iteration_bounds = array<i64: 2, 1>, scalar_prefetch = 0 : i64, scratch_operands = 1 : i64, tpu.core_type = #tpu.core_type<tc>, window_params = [{transform_indices = @transform_0, window_bounds = array<i64: 1, 8, 3, 128>}, {transform_indices = @transform_1, window_bounds = array<i64: 1, 8, 4, 128>}, {pipeline_mode = #tpu.pipeline_mode<synchronous>, transform_indices = @transform_2, window_bounds = array<i64: 8, 16>}, {pipeline_mode = #tpu.pipeline_mode<synchronous>, transform_indices = @transform_3, window_bounds = array<i64: 4, 1>}, {transform_indices = @transform_4, window_bounds = array<i64: 1, 4, 128>}, {transform_indices = @transform_5, window_bounds = array<i64: 1, 4, 128>}]} {
    %cst = arith.constant 0.000000e+00 : f32
    %0 = vector.broadcast %cst : f32 to vector<16x128xf32>
    %c0 = arith.constant 0 : index
    %c0_0 = arith.constant 0 : index
    %1 = vector.load %arg8[%c0, %c0_0] : memref<16x128xf32, #tpu.memory_space<vmem>>, vector<16x128xf32>
    tpu.vector_store %arg8[%c0, %c0_0], %0 {strides = array<i32>} : memref<16x128xf32, #tpu.memory_space<vmem>>, vector<16x128xf32>,
    %c0_1 = arith.constant 0 : index
    %c0_2 = arith.constant 0 : index
    %c0_3 = arith.constant 0 : index
    %c0_4 = arith.constant 0 : index
    %2 = vector.load %arg2[%c0_1, %c0_2, %c0_3, %c0_4] : memref<1x8x3x128xbf16, #tpu.memory_space<vmem>>, vector<1x1x3x128xbf16>
    %3 = vector.shape_cast %2 : vector<1x1x3x128xbf16> to vector<3x128xbf16>
    %4 = arith.extf %3 : vector<3x128xbf16> to vector<3x128xf32>
    %c0_5 = arith.constant 0 : index
    %c0_6 = arith.constant 0 : index
    %5 = vector.load %arg8[%c0_5, %c0_6] : memref<16x128xf32, #tpu.memory_space<vmem>>, vector<3x128xf32>
    tpu.vector_store %arg8[%c0_5, %c0_6], %4 {strides = array<i32>} : memref<16x128xf32, #tpu.memory_space<vmem>>, vector<3x128xf32>,
    %c0_7 = arith.constant 0 : index
    %c0_8 = arith.constant 0 : index
    %c0_9 = arith.constant 0 : index
    %c0_10 = arith.constant 0 : index
    %6 = vector.load %arg3[%c0_7, %c0_8, %c0_9, %c0_10] : memref<1x8x4x128xbf16, #tpu.memory_space<vmem>>, vector<1x1x4x128xbf16>
    %7 = vector.shape_cast %6 : vector<1x1x4x128xbf16> to vector<4x128xbf16>
    %8 = arith.extf %7 : vector<4x128xbf16> to vector<4x128xf32>
    %c8 = arith.constant 8 : index
    %c0_11 = arith.constant 0 : index
    %9 = vector.load %arg8[%c8, %c0_11] : memref<16x128xf32, #tpu.memory_space<vmem>>, vector<4x128xf32>
    tpu.vector_store %arg8[%c8, %c0_11], %8 {strides = array<i32>} : memref<16x128xf32, #tpu.memory_space<vmem>>, vector<4x128xf32>,
    %c0_12 = arith.constant 0 : index
    %c0_13 = arith.constant 0 : index
    %10 = vector.load %arg4[%c0_12, %c0_13] : memref<8x16xf32, #tpu.memory_space<vmem>>, vector<8x16xf32>
    %c0_14 = arith.constant 0 : index
    %c0_15 = arith.constant 0 : index
    %11 = vector.load %arg8[%c0_14, %c0_15] : memref<16x128xf32, #tpu.memory_space<vmem>>, vector<16x128xf32>
    %cst_16 = arith.constant dense<0.000000e+00> : vector<8x128xf32>
    %12 = tpu.matmul %10, %11, %cst_16 {dimension_numbers = #tpu.dot_dimension_numbers<[1], [0], [0], [1], [0, 0, 1, 1], [], []>} : vector<8x16xf32>, vector<16x128xf32>, vector<8x128xf32> -> vector<8x128xf32>
    %c0_17 = arith.constant 0 : index
    %c1 = arith.constant 1 : index
    %c0_18 = arith.constant 0 : index
    %c0_19 = arith.constant 0 : index
    %13 = vector.load %arg2[%c0_17, %c1, %c0_18, %c0_19] : memref<1x8x3x128xbf16, #tpu.memory_space<vmem>>, vector<1x1x3x128xbf16>
    %14 = vector.shape_cast %13 : vector<1x1x3x128xbf16> to vector<3x128xbf16>
    %15 = arith.extf %14 : vector<3x128xbf16> to vector<3x128xf32>
    %c0_20 = arith.constant 0 : index
    %c0_21 = arith.constant 0 : index
    %16 = vector.load %arg8[%c0_20, %c0_21] : memref<16x128xf32, #tpu.memory_space<vmem>>, vector<3x128xf32>
    tpu.vector_store %arg8[%c0_20, %c0_21], %15 {strides = array<i32>} : memref<16x128xf32, #tpu.memory_space<vmem>>, vector<3x128xf32>,
    %c0_22 = arith.constant 0 : index
    %c1_23 = arith.constant 1 : index
    %c0_24 = arith.constant 0 : index
    %c0_25 = arith.constant 0 : index
    %17 = vector.load %arg3[%c0_22, %c1_23, %c0_24, %c0_25] : memref<1x8x4x128xbf16, #tpu.memory_space<vmem>>, vector<1x1x4x128xbf16>
    %18 = vector.shape_cast %17 : vector<1x1x4x128xbf16> to vector<4x128xbf16>
    %19 = arith.extf %18 : vector<4x128xbf16> to vector<4x128xf32>
    %c8_26 = arith.constant 8 : index
    %c0_27 = arith.constant 0 : index
    %20 = vector.load %arg8[%c8_26, %c0_27] : memref<16x128xf32, #tpu.memory_space<vmem>>, vector<4x128xf32>
    tpu.vector_store %arg8[%c8_26, %c0_27], %19 {strides = array<i32>} : memref<16x128xf32, #tpu.memory_space<vmem>>, vector<4x128xf32>,
    %c0_28 = arith.constant 0 : index
    %c0_29 = arith.constant 0 : index
    %21 = vector.load %arg4[%c0_28, %c0_29] : memref<8x16xf32, #tpu.memory_space<vmem>>, vector<8x16xf32>
    %c0_30 = arith.constant 0 : index
    %c0_31 = arith.constant 0 : index
    %22 = vector.load %arg8[%c0_30, %c0_31] : memref<16x128xf32, #tpu.memory_space<vmem>>, vector<16x128xf32>
    %cst_32 = arith.constant dense<0.000000e+00> : vector<8x128xf32>
    %23 = tpu.matmul %21, %22, %cst_32 {dimension_numbers = #tpu.dot_dimension_numbers<[1], [0], [0], [1], [0, 0, 1, 1], [], []>} : vector<8x16xf32>, vector<16x128xf32>, vector<8x128xf32> -> vector<8x128xf32>
    %24 = arith.maximumf %12, %23 : vector<8x128xf32>
    %c0_33 = arith.constant 0 : index
    %c2 = arith.constant 2 : index
    %c0_34 = arith.constant 0 : index
    %c0_35 = arith.constant 0 : index
    %25 = vector.load %arg2[%c0_33, %c2, %c0_34, %c0_35] : memref<1x8x3x128xbf16, #tpu.memory_space<vmem>>, vector<1x1x3x128xbf16>
    %26 = vector.shape_cast %25 : vector<1x1x3x128xbf16> to vector<3x128xbf16>
    %27 = arith.extf %26 : vector<3x128xbf16> to vector<3x128xf32>
    %c0_36 = arith.constant 0 : index
    %c0_37 = arith.constant 0 : index
    %28 = vector.load %arg8[%c0_36, %c0_37] : memref<16x128xf32, #tpu.memory_space<vmem>>, vector<3x128xf32>
    tpu.vector_store %arg8[%c0_36, %c0_37], %27 {strides = array<i32>} : memref<16x128xf32, #tpu.memory_space<vmem>>, vector<3x128xf32>,
    %c0_38 = arith.constant 0 : index
    %c2_39 = arith.constant 2 : index
    %c0_40 = arith.constant 0 : index
    %c0_41 = arith.constant 0 : index
    %29 = vector.load %arg3[%c0_38, %c2_39, %c0_40, %c0_41] : memref<1x8x4x128xbf16, #tpu.memory_space<vmem>>, vector<1x1x4x128xbf16>
    %30 = vector.shape_cast %29 : vector<1x1x4x128xbf16> to vector<4x128xbf16>
    %31 = arith.extf %30 : vector<4x128xbf16> to vector<4x128xf32>
    %c8_42 = arith.constant 8 : index
    %c0_43 = arith.constant 0 : index
    %32 = vector.load %arg8[%c8_42, %c0_43] : memref<16x128xf32, #tpu.memory_space<vmem>>, vector<4x128xf32>
    tpu.vector_store %arg8[%c8_42, %c0_43], %31 {strides = array<i32>} : memref<16x128xf32, #tpu.memory_space<vmem>>, vector<4x128xf32>,
    %c0_44 = arith.constant 0 : index
    %c0_45 = arith.constant 0 : index
    %33 = vector.load %arg4[%c0_44, %c0_45] : memref<8x16xf32, #tpu.memory_space<vmem>>, vector<8x16xf32>
    %c0_46 = arith.constant 0 : index
    %c0_47 = arith.constant 0 : index
    %34 = vector.load %arg8[%c0_46, %c0_47] : memref<16x128xf32, #tpu.memory_space<vmem>>, vector<16x128xf32>
    %cst_48 = arith.constant dense<0.000000e+00> : vector<8x128xf32>
    %35 = tpu.matmul %33, %34, %cst_48 {dimension_numbers = #tpu.dot_dimension_numbers<[1], [0], [0], [1], [0, 0, 1, 1], [], []>} : vector<8x16xf32>, vector<16x128xf32>, vector<8x128xf32> -> vector<8x128xf32>
    %36 = arith.maximumf %24, %35 : vector<8x128xf32>
    %c0_49 = arith.constant 0 : index
    %c3 = arith.constant 3 : index
    %c0_50 = arith.constant 0 : index
    %c0_51 = arith.constant 0 : index
    %37 = vector.load %arg2[%c0_49, %c3, %c0_50, %c0_51] : memref<1x8x3x128xbf16, #tpu.memory_space<vmem>>, vector<1x1x3x128xbf16>
    %38 = vector.shape_cast %37 : vector<1x1x3x128xbf16> to vector<3x128xbf16>
    %39 = arith.extf %38 : vector<3x128xbf16> to vector<3x128xf32>
    %c0_52 = arith.constant 0 : index
    %c0_53 = arith.constant 0 : index
    %40 = vector.load %arg8[%c0_52, %c0_53] : memref<16x128xf32, #tpu.memory_space<vmem>>, vector<3x128xf32>
    tpu.vector_store %arg8[%c0_52, %c0_53], %39 {strides = array<i32>} : memref<16x128xf32, #tpu.memory_space<vmem>>, vector<3x128xf32>,
    %c0_54 = arith.constant 0 : index
    %c3_55 = arith.constant 3 : index
    %c0_56 = arith.constant 0 : index
    %c0_57 = arith.constant 0 : index
    %41 = vector.load %arg3[%c0_54, %c3_55, %c0_56, %c0_57] : memref<1x8x4x128xbf16, #tpu.memory_space<vmem>>, vector<1x1x4x128xbf16>
    %42 = vector.shape_cast %41 : vector<1x1x4x128xbf16> to vector<4x128xbf16>
    %43 = arith.extf %42 : vector<4x128xbf16> to vector<4x128xf32>
    %c8_58 = arith.constant 8 : index
    %c0_59 = arith.constant 0 : index
    %44 = vector.load %arg8[%c8_58, %c0_59] : memref<16x128xf32, #tpu.memory_space<vmem>>, vector<4x128xf32>
    tpu.vector_store %arg8[%c8_58, %c0_59], %43 {strides = array<i32>} : memref<16x128xf32, #tpu.memory_space<vmem>>, vector<4x128xf32>,
    %c0_60 = arith.constant 0 : index
    %c0_61 = arith.constant 0 : index
    %45 = vector.load %arg4[%c0_60, %c0_61] : memref<8x16xf32, #tpu.memory_space<vmem>>, vector<8x16xf32>
    %c0_62 = arith.constant 0 : index
    %c0_63 = arith.constant 0 : index
    %46 = vector.load %arg8[%c0_62, %c0_63] : memref<16x128xf32, #tpu.memory_space<vmem>>, vector<16x128xf32>
    %cst_64 = arith.constant dense<0.000000e+00> : vector<8x128xf32>
    %47 = tpu.matmul %45, %46, %cst_64 {dimension_numbers = #tpu.dot_dimension_numbers<[1], [0], [0], [1], [0, 0, 1, 1], [], []>} : vector<8x16xf32>, vector<16x128xf32>, vector<8x128xf32> -> vector<8x128xf32>
    %48 = arith.maximumf %36, %47 : vector<8x128xf32>
    %c0_65 = arith.constant 0 : index
    %c4 = arith.constant 4 : index
    %c0_66 = arith.constant 0 : index
    %c0_67 = arith.constant 0 : index
    %49 = vector.load %arg2[%c0_65, %c4, %c0_66, %c0_67] : memref<1x8x3x128xbf16, #tpu.memory_space<vmem>>, vector<1x1x3x128xbf16>
    %50 = vector.shape_cast %49 : vector<1x1x3x128xbf16> to vector<3x128xbf16>
    %51 = arith.extf %50 : vector<3x128xbf16> to vector<3x128xf32>
    %c0_68 = arith.constant 0 : index
    %c0_69 = arith.constant 0 : index
    %52 = vector.load %arg8[%c0_68, %c0_69] : memref<16x128xf32, #tpu.memory_space<vmem>>, vector<3x128xf32>
    tpu.vector_store %arg8[%c0_68, %c0_69], %51 {strides = array<i32>} : memref<16x128xf32, #tpu.memory_space<vmem>>, vector<3x128xf32>,
    %c0_70 = arith.constant 0 : index
    %c4_71 = arith.constant 4 : index
    %c0_72 = arith.constant 0 : index
    %c0_73 = arith.constant 0 : index
    %53 = vector.load %arg3[%c0_70, %c4_71, %c0_72, %c0_73] : memref<1x8x4x128xbf16, #tpu.memory_space<vmem>>, vector<1x1x4x128xbf16>
    %54 = vector.shape_cast %53 : vector<1x1x4x128xbf16> to vector<4x128xbf16>
    %55 = arith.extf %54 : vector<4x128xbf16> to vector<4x128xf32>
    %c8_74 = arith.constant 8 : index
    %c0_75 = arith.constant 0 : index
    %56 = vector.load %arg8[%c8_74, %c0_75] : memref<16x128xf32, #tpu.memory_space<vmem>>, vector<4x128xf32>
    tpu.vector_store %arg8[%c8_74, %c0_75], %55 {strides = array<i32>} : memref<16x128xf32, #tpu.memory_space<vmem>>, vector<4x128xf32>,
    %c0_76 = arith.constant 0 : index
    %c0_77 = arith.constant 0 : index
    %57 = vector.load %arg4[%c0_76, %c0_77] : memref<8x16xf32, #tpu.memory_space<vmem>>, vector<8x16xf32>
    %c0_78 = arith.constant 0 : index
    %c0_79 = arith.constant 0 : index
    %58 = vector.load %arg8[%c0_78, %c0_79] : memref<16x128xf32, #tpu.memory_space<vmem>>, vector<16x128xf32>
    %cst_80 = arith.constant dense<0.000000e+00> : vector<8x128xf32>
    %59 = tpu.matmul %57, %58, %cst_80 {dimension_numbers = #tpu.dot_dimension_numbers<[1], [0], [0], [1], [0, 0, 1, 1], [], []>} : vector<8x16xf32>, vector<16x128xf32>, vector<8x128xf32> -> vector<8x128xf32>
    %60 = arith.maximumf %48, %59 : vector<8x128xf32>
    %c0_81 = arith.constant 0 : index
    %c5 = arith.constant 5 : index
    %c0_82 = arith.constant 0 : index
    %c0_83 = arith.constant 0 : index
    %61 = vector.load %arg2[%c0_81, %c5, %c0_82, %c0_83] : memref<1x8x3x128xbf16, #tpu.memory_space<vmem>>, vector<1x1x3x128xbf16>
    %62 = vector.shape_cast %61 : vector<1x1x3x128xbf16> to vector<3x128xbf16>
    %63 = arith.extf %62 : vector<3x128xbf16> to vector<3x128xf32>
    %c0_84 = arith.constant 0 : index
    %c0_85 = arith.constant 0 : index
    %64 = vector.load %arg8[%c0_84, %c0_85] : memref<16x128xf32, #tpu.memory_space<vmem>>, vector<3x128xf32>
    tpu.vector_store %arg8[%c0_84, %c0_85], %63 {strides = array<i32>} : memref<16x128xf32, #tpu.memory_space<vmem>>, vector<3x128xf32>,
    %c0_86 = arith.constant 0 : index
    %c5_87 = arith.constant 5 : index
    %c0_88 = arith.constant 0 : index
    %c0_89 = arith.constant 0 : index
    %65 = vector.load %arg3[%c0_86, %c5_87, %c0_88, %c0_89] : memref<1x8x4x128xbf16, #tpu.memory_space<vmem>>, vector<1x1x4x128xbf16>
    %66 = vector.shape_cast %65 : vector<1x1x4x128xbf16> to vector<4x128xbf16>
    %67 = arith.extf %66 : vector<4x128xbf16> to vector<4x128xf32>
    %c8_90 = arith.constant 8 : index
    %c0_91 = arith.constant 0 : index
    %68 = vector.load %arg8[%c8_90, %c0_91] : memref<16x128xf32, #tpu.memory_space<vmem>>, vector<4x128xf32>
    tpu.vector_store %arg8[%c8_90, %c0_91], %67 {strides = array<i32>} : memref<16x128xf32, #tpu.memory_space<vmem>>, vector<4x128xf32>,
    %c0_92 = arith.constant 0 : index
    %c0_93 = arith.constant 0 : index
    %69 = vector.load %arg4[%c0_92, %c0_93] : memref<8x16xf32, #tpu.memory_space<vmem>>, vector<8x16xf32>
    %c0_94 = arith.constant 0 : index
    %c0_95 = arith.constant 0 : index
    %70 = vector.load %arg8[%c0_94, %c0_95] : memref<16x128xf32, #tpu.memory_space<vmem>>, vector<16x128xf32>
    %cst_96 = arith.constant dense<0.000000e+00> : vector<8x128xf32>
    %71 = tpu.matmul %69, %70, %cst_96 {dimension_numbers = #tpu.dot_dimension_numbers<[1], [0], [0], [1], [0, 0, 1, 1], [], []>} : vector<8x16xf32>, vector<16x128xf32>, vector<8x128xf32> -> vector<8x128xf32>
    %72 = arith.maximumf %60, %71 : vector<8x128xf32>
    %c0_97 = arith.constant 0 : index
    %c6 = arith.constant 6 : index
    %c0_98 = arith.constant 0 : index
    %c0_99 = arith.constant 0 : index
    %73 = vector.load %arg2[%c0_97, %c6, %c0_98, %c0_99] : memref<1x8x3x128xbf16, #tpu.memory_space<vmem>>, vector<1x1x3x128xbf16>
    %74 = vector.shape_cast %73 : vector<1x1x3x128xbf16> to vector<3x128xbf16>
    %75 = arith.extf %74 : vector<3x128xbf16> to vector<3x128xf32>
    %c0_100 = arith.constant 0 : index
    %c0_101 = arith.constant 0 : index
    %76 = vector.load %arg8[%c0_100, %c0_101] : memref<16x128xf32, #tpu.memory_space<vmem>>, vector<3x128xf32>
    tpu.vector_store %arg8[%c0_100, %c0_101], %75 {strides = array<i32>} : memref<16x128xf32, #tpu.memory_space<vmem>>, vector<3x128xf32>,
    %c0_102 = arith.constant 0 : index
    %c6_103 = arith.constant 6 : index
    %c0_104 = arith.constant 0 : index
    %c0_105 = arith.constant 0 : index
    %77 = vector.load %arg3[%c0_102, %c6_103, %c0_104, %c0_105] : memref<1x8x4x128xbf16, #tpu.memory_space<vmem>>, vector<1x1x4x128xbf16>
    %78 = vector.shape_cast %77 : vector<1x1x4x128xbf16> to vector<4x128xbf16>
    %79 = arith.extf %78 : vector<4x128xbf16> to vector<4x128xf32>
    %c8_106 = arith.constant 8 : index
    %c0_107 = arith.constant 0 : index
    %80 = vector.load %arg8[%c8_106, %c0_107] : memref<16x128xf32, #tpu.memory_space<vmem>>, vector<4x128xf32>
    tpu.vector_store %arg8[%c8_106, %c0_107], %79 {strides = array<i32>} : memref<16x128xf32, #tpu.memory_space<vmem>>, vector<4x128xf32>,
    %c0_108 = arith.constant 0 : index
    %c0_109 = arith.constant 0 : index
    %81 = vector.load %arg4[%c0_108, %c0_109] : memref<8x16xf32, #tpu.memory_space<vmem>>, vector<8x16xf32>
    %c0_110 = arith.constant 0 : index
    %c0_111 = arith.constant 0 : index
    %82 = vector.load %arg8[%c0_110, %c0_111] : memref<16x128xf32, #tpu.memory_space<vmem>>, vector<16x128xf32>
    %cst_112 = arith.constant dense<0.000000e+00> : vector<8x128xf32>
    %83 = tpu.matmul %81, %82, %cst_112 {dimension_numbers = #tpu.dot_dimension_numbers<[1], [0], [0], [1], [0, 0, 1, 1], [], []>} : vector<8x16xf32>, vector<16x128xf32>, vector<8x128xf32> -> vector<8x128xf32>
    %84 = arith.maximumf %72, %83 : vector<8x128xf32>
    %c0_113 = arith.constant 0 : index
    %c7 = arith.constant 7 : index
    %c0_114 = arith.constant 0 : index
    %c0_115 = arith.constant 0 : index
    %85 = vector.load %arg2[%c0_113, %c7, %c0_114, %c0_115] : memref<1x8x3x128xbf16, #tpu.memory_space<vmem>>, vector<1x1x3x128xbf16>
    %86 = vector.shape_cast %85 : vector<1x1x3x128xbf16> to vector<3x128xbf16>
    %87 = arith.extf %86 : vector<3x128xbf16> to vector<3x128xf32>
    %c0_116 = arith.constant 0 : index
    %c0_117 = arith.constant 0 : index
    %88 = vector.load %arg8[%c0_116, %c0_117] : memref<16x128xf32, #tpu.memory_space<vmem>>, vector<3x128xf32>
    tpu.vector_store %arg8[%c0_116, %c0_117], %87 {strides = array<i32>} : memref<16x128xf32, #tpu.memory_space<vmem>>, vector<3x128xf32>,
    %c0_118 = arith.constant 0 : index
    %c7_119 = arith.constant 7 : index
    %c0_120 = arith.constant 0 : index
    %c0_121 = arith.constant 0 : index
    %89 = vector.load %arg3[%c0_118, %c7_119, %c0_120, %c0_121] : memref<1x8x4x128xbf16, #tpu.memory_space<vmem>>, vector<1x1x4x128xbf16>
    %90 = vector.shape_cast %89 : vector<1x1x4x128xbf16> to vector<4x128xbf16>
    %91 = arith.extf %90 : vector<4x128xbf16> to vector<4x128xf32>
    %c8_122 = arith.constant 8 : index
    %c0_123 = arith.constant 0 : index
    %92 = vector.load %arg8[%c8_122, %c0_123] : memref<16x128xf32, #tpu.memory_space<vmem>>, vector<4x128xf32>
    tpu.vector_store %arg8[%c8_122, %c0_123], %91 {strides = array<i32>} : memref<16x128xf32, #tpu.memory_space<vmem>>, vector<4x128xf32>,
    %c0_124 = arith.constant 0 : index
    %c0_125 = arith.constant 0 : index
    %93 = vector.load %arg4[%c0_124, %c0_125] : memref<8x16xf32, #tpu.memory_space<vmem>>, vector<8x16xf32>
    %c0_126 = arith.constant 0 : index
    %c0_127 = arith.constant 0 : index
    %94 = vector.load %arg8[%c0_126, %c0_127] : memref<16x128xf32, #tpu.memory_space<vmem>>, vector<16x128xf32>
    %cst_128 = arith.constant dense<0.000000e+00> : vector<8x128xf32>
    %95 = tpu.matmul %93, %94, %cst_128 {dimension_numbers = #tpu.dot_dimension_numbers<[1], [0], [0], [1], [0, 0, 1, 1], [], []>} : vector<8x16xf32>, vector<16x128xf32>, vector<8x128xf32> -> vector<8x128xf32>
    %96 = arith.maximumf %84, %95 : vector<8x128xf32>
    %97 = vector.extract_strided_slice %96 {offsets = [0, 0], sizes = [4, 128], strides = [1, 1]} : vector<8x128xf32> to vector<4x128xf32>
    %c0_129 = arith.constant 0 : index
    %c0_130 = arith.constant 0 : index
    %98 = vector.load %arg5[%c0_129, %c0_130] : memref<4x1xf32, #tpu.memory_space<vmem>>, vector<4x1xf32>
    %99 = vector.broadcast %98 : vector<4x1xf32> to vector<4x128xf32>
    %100 = arith.addf %97, %99 : vector<4x128xf32>
    %c0_131 = arith.constant 0 : index
    %c0_132 = arith.constant 0 : index
    %c0_133 = arith.constant 0 : index
    %101 = vector.load %arg6[%c0_131, %c0_132, %c0_133] : memref<1x4x128xbf16, #tpu.memory_space<vmem>>, vector<1x4x128xbf16>
    %102 = vector.shape_cast %101 : vector<1x4x128xbf16> to vector<4x128xbf16>
    %103 = arith.extf %102 : vector<4x128xbf16> to vector<4x128xf32>
    %104 = arith.addf %100, %103 : vector<4x128xf32>
    %cst_134 = arith.constant 0.000000e+00 : f32
    %105 = vector.broadcast %cst_134 : f32 to vector<4x128xf32>
    %106 = arith.maximumf %104, %105 : vector<4x128xf32>
    %c0_135 = arith.constant 0 : index
    %c0_136 = arith.constant 0 : index
    %c0_137 = arith.constant 0 : index
    %107 = vector.load %arg7[%c0_135, %c0_136, %c0_137] : memref<1x4x128xf32, #tpu.memory_space<vmem>>, vector<1x4x128xf32>
    %108 = vector.shape_cast %107 : vector<1x4x128xf32> to vector<4x128xf32>
    %109 = vector.shape_cast %106 : vector<4x128xf32> to vector<1x4x128xf32>
    tpu.vector_store %arg7[%c0_135, %c0_136, %c0_137], %109 {strides = array<i32>} : memref<1x4x128xf32, #tpu.memory_space<vmem>>, vector<1x4x128xf32>,
    return
  }
  func.func @transform_0(%arg0: i32, %arg1: i32) -> (i32, i32, i32, i32) {
    %c0_i32 = arith.constant 0 : i32
    %c0_i32_0 = arith.constant 0 : i32
    %c0_i32_1 = arith.constant 0 : i32
    return %arg0, %c0_i32, %c0_i32_0, %arg1 : i32, i32, i32, i32
  }
  func.func @transform_1(%arg0: i32, %arg1: i32) -> (i32, i32, i32, i32) {
    %c0_i32 = arith.constant 0 : i32
    %c0_i32_0 = arith.constant 0 : i32
    %c0_i32_1 = arith.constant 0 : i32
    return %arg0, %c0_i32, %c0_i32_0, %arg1 : i32, i32, i32, i32
  }
  func.func @transform_2(%arg0: i32, %arg1: i32) -> (i32, i32) {
    %c0_i32 = arith.constant 0 : i32
    %c0_i32_0 = arith.constant 0 : i32
    %c0_i32_1 = arith.constant 0 : i32
    return %c0_i32, %c0_i32_0 : i32, i32
  }
  func.func @transform_3(%arg0: i32, %arg1: i32) -> (i32, i32) {
    %c0_i32 = arith.constant 0 : i32
    %c0_i32_0 = arith.constant 0 : i32
    %c0_i32_1 = arith.constant 0 : i32
    return %c0_i32, %c0_i32_0 : i32, i32
  }
  func.func @transform_4(%arg0: i32, %arg1: i32) -> (i32, i32, i32) {
    %c0_i32 = arith.constant 0 : i32
    %c0_i32_0 = arith.constant 0 : i32
    return %arg0, %c0_i32, %arg1 : i32, i32, i32
  }
  func.func @transform_5(%arg0: i32, %arg1: i32) -> (i32, i32, i32) {
    %c0_i32 = arith.constant 0 : i32
    %c0_i32_0 = arith.constant 0 : i32
    return %arg0, %c0_i32, %arg1 : i32, i32, i32
  }
}

</mosaic_0001>

<bundles_post_ra>
// kernel: tpu_custom_call.1
= control target key start
LH: loop header
LB: loop body
LE: loop exit
PB: predicated region body
PF: predicated region fallthrough
CT: control target
= control target key end

     0   :  { %10 = vsyncpa [#allocation4], 0  ;;  %s1586_s0 = inlined_call_operand.vmem [shape: bf16[2,8,3,128], index: 0, kind: input, shape index: {}]   ;;  %s1587_s1 = inlined_call_operand.vmem [shape: bf16[2,8,4,128], index: 1, kind: input, shape index: {}]   ;;  %s1588_s2 = inlined_call_operand.vmem [shape: f32[8,16], index: 2, kind: input, shape index: {}]   ;;  %s1589_s3 = inlined_call_operand.vmem [shape: f32[4,1], index: 3, kind: input, shape index: {}]   ;;  %s1590_s4 = inlined_call_operand.vmem [shape: bf16[2,4,128], index: 4, kind: input, shape index: {}]   ;;  %s1591_s5 = inlined_call_operand.hbm [shape: f32[2,4,128], index: 5, kind: output, shape index: {}]  }
   0x1   :  { %12 = vsyncpa [#allocation4 + $0x1], 0  ;;  %s1411_s18 = smov 0   ;;  %s1413_s19 = smov 0  }
   0x2   :  { %s1415_s20 = smov 0   ;;  %s1417_s21 = smov 0  }
   0x3   :  { %s1419_s22 = smov 0   ;;  %s1421_s23 = smov 0  }
   0x4 LB: > { %s1121_s24 = sadd.s32 4294967295, %s1375_s23   ;;  %s1122_s25 = sadd.s32 4294967294, %s1375_s23   ;;  %s1375_s23 = sphi %s1421_s23, %s18_s23   ;;  %s1371_s22 = sphi %s1419_s22, %s1598_s22   ;;  %s1367_s21 = sphi %s1417_s21, %s1597_s21   ;;  %s1363_s20 = sphi %s1415_s20, %s1596_s20   ;;  %s1359_s19 = sphi %s1413_s19, %s1595_s19   ;;  %s1355_s18 = sphi %s1411_s18, %s1594_s18  }
   0x5   : > { %s30_s26 = sadd.s32 1, %s1371_s22  ;;  %s165_s27 = sadd.s32 1, %s1363_s20 }
   0x6   : > { %p32_p0 = scmp.ge.s32.totalorder %s30_s26, 2  ;;  %p175_p1 = scmp.ne.s32.totalorder %s1363_s20, %s1359_s19 }
   0x7   : > { %p176_p2 = scmp.eq.s32.totalorder %s1121_s24, 1  ;;  %p181_p3 = scmp.ne.s32.totalorder %s1359_s19, %s1355_s18 }
   0x8   : > { %s1600_s26 = smov (%p32_p0, %s30_s26), 0  ;;  %p182_p5 = scmp.eq.s32.totalorder %s1122_s25, 1 }
   0x9   : > { %p1451_p4 = por %p176_p2, %p175_p1  ;;  %s160_s29 = ssub.s32 %s1371_s22, %s1600_s26 }
   0xa   : > { %p1125_p6 = scmp.ge.s32.totalorder %s1375_s23, 1  ;;  %p163_p7 = scmp.eq.s32.totalorder %s160_s29, 0 }
   0xb   : > { %p1458_p8 = por %p182_p5, %p181_p3  ;;  %p238_p9 = scmp.lt.s32.totalorder %s1375_s23, 3 }
   0xc   : > { %s1464_s6 = scalar_select %p163_p7, %s1363_s20, %s165_s27  }
   0xd   : > { %p239_p10 = pnand %p1125_p6, %p238_p9 }
   0xe   : > { %p284_p11 = scmp.lt.s32.totalorder (!%p239_p10), %s1367_s21, 1  ;;  %s281_s8 = sand.u32 (!%p239_p10), 1, %s1359_s19  }
   0xf   : > { %242 = sbr.rel (%p239_p10) target bundleno = 308 (0x134), region = 40  ;;  %s1155_s11 = sshll.u32 (!%p239_p10), %s1367_s21, 6 }
  0x10   : > { %s1012_s15 = scalar_lea.hbm (!%p239_p10), %s1591_s5, %s1155_s11  ;;  %s1380_s24 = smov (!%p239_p10), [#allocation3]  }
  0x14   : > { %v1377_v0 = vmov 0.0   ;;  %v987_v1 = vld [vmem:[%s1589_s3] sm:$0xf]  ;;  %s1475_s9 = scalar_select %p284_p11, %s1367_s21, 1  ;;  %vm1378_vm0 = vmmov 0   ;;  %v1379_v2 = vmov 0  }
  0x15   : > { %1184 = vmatprep.subr.mxu0 %v1377_v0  ;;  %307 = vst [vmem:[#allocation2] sm:$0xff] %v1377_v0  ;;  %308 = vst [vmem:[#allocation2 + $0x8] sm:$0xff] %v1377_v0  ;;  %1191 = vmatprep.subr.mxu1 %v1377_v0  ;;  %v1497_v9 = vld [vmem:[%s1588_s2] sm:$0xff]  ;;  %vm318_vm1 = vcmask 130048  }
  0x16   : > { %1188 = vmatprep.mubr.msk.f32.mxu0 %vm1378_vm0, %v1377_v0  ;;  %1195 = vmatprep.mubr.msk.f32.mxu1 %vm1378_vm0, %v1377_v0  ;;  %s1158_s10 = sshll.u32 %s1475_s9, 4  ;;  %s1131_s25 = sshll.u32 %s1475_s9, 1 }
  0x17   : > { %1298 = vset.pattern.permute.xlu0 %v1379_v2  ;;  %s1485_s13 = scalar_lea.vmem %s1587_s1, %s1158_s10  ;;  %s1490_s16 = scalar_lea.vmem %s1586_s0, %s1158_s10 }
  0x18   : > { %990 = vperm.xlu0 %1298, %v987_v1   ;;  %v312_v3 = vld [vmem:[%s1485_s13] sm:$0xff]   ;;  %v1143_v16 = vld [vmem:[%s1485_s13 + $0x8] sm:$0xff]   ;;  %s306_s7 = scalar_lea.vmem %s1590_s4, %s1131_s25  ;;  %s1126_s10 = sshll.u32 %s281_s8, 2 }
  0x19   : > { %v309_v4 = vld [vmem:[%s1490_s16] sm:$0xff]   ;;  %v313_v5 = vunpack.c.l.bf16 %v312_v3  ;;  %v483_v10 = vunpack.c.h.bf16 %v312_v3  ;;  %v1142_v17 = vld [vmem:[%s1490_s16 + $0x8] sm:$0xff]   ;;  %v653_v18 = vunpack.c.l.bf16 %v1143_v16  ;;  %v823_v24 = vunpack.c.h.bf16 %v1143_v16  ;;  %s283_s12 = scalar_lea.vmem [#allocation3], %s1126_s10  ;;  %s1000_s16 = scalar_lea.sflag [#allocation4], %s281_s8 }
  0x1a   : > { %v310_v6 = vunpack.c.l.bf16 %v309_v4  ;;  %v479_v11 = vunpack.c.h.bf16 %v309_v4  ;;  %v649_v19 = vunpack.c.l.bf16 %v1142_v17  ;;  %v819_v25 = vunpack.c.h.bf16 %v1142_v17  ;;  %v994_v51 = vld [vmem:[%s306_s7] sm:$0x3]  ;;  %s1014_s9 = sshll.u32 %s283_s12, 4  ;;  %s1303_s25 = sshll.u32 %s1380_s24, 4  ;;  %s1015_s9 = int_to_ptr.vmem [resolvable:$true] %s1014_s9  ;;  %s1304_s25 = int_to_ptr.vmem [resolvable:$false] %s1303_s25 }
  0x1b   : > { %314 = vst [vmem:[#allocation2 + $0x8] sm:$0xf] %v313_v5  ;;  %v995_v56 = vunpack.c.l.bf16 %v994_v51  ;;  %s1299_s17 = scalar_lea.vmem %s1015_s9, 64  ;;  %s1305_s21 = scalar_lea.vmem %s1304_s25, 128 }
  0x1c   : > { %311 = vst [vmem:[#allocation2] sm:$0x7] %v310_v6  ;;  %p1300_p12 = scmp.ne.s32.totalorder %s1015_s9, %s1299_s17  ;;  %p1306_p1 = scmp.lt.s32.totalorder %s1015_s9, %s1304_s25 }
  0x1d   : > { %p1307_p2 = scmp.lt.s32.totalorder %s1305_s21, %s1299_s17 }
  0x1e   : > { %p1301_p13 = pnand %p1300_p12, %p1451_p4 }
  0x1f   : > { %p1308_p3 = por %p1307_p2, %p1306_p1 }
  0x20   : > { %p1302_p0 = pneg %p1301_p13 }
  0x22   : > { %v317_v7 = vld [vmem:[#allocation2 + $0x8] sm:$0xff]  ;;  %p1309_p5 = pnand %p1308_p3, %p1302_p0 }
  0x23   : > { %v316_v8 = vld [vmem:[#allocation2] sm:$0xff]  ;;  %1185 = vmatpush3.msra.mxu0 %v317_v7  ;;  %399 = vst [vmem:[#allocation2 + $0x4] sm:$0xf0] %v313_v5 }
  0x24   : > { %395 = vst [vmem:[#allocation2 - $0x4] sm:$0x70] %v310_v6  ;;  %1186 = vmatprep.subr.mxu0 %v1377_v0 }
  0x25   : > { %1187 = vmatpush3.msra.mxu0 %v316_v8 }
  0x26   : > { %1189 = vmatmul.mubr.msk.f32.vlgmr.msra.gmra.mxu0 %vm318_vm1, %v1497_v9  ;;  %1198 = vmatprep.subr.mxu0 %v1377_v0 }
  0x27   : > { %1202 = vmatprep.mubr.msk.f32.mxu0 %vm1378_vm0, %v1377_v0 }
  0x2a   : > { %v402_v12 = vld [vmem:[#allocation2 + $0x8] sm:$0xff] }
  0x2b   : > { %v401_v13 = vld [vmem:[#allocation2] sm:$0xff]  ;;  %1192 = vmatpush3.msra.mxu1 %v402_v12  ;;  %484 = vst [vmem:[#allocation2 + $0x8] sm:$0xf] %v483_v10 }
  0x2c   : > { %480 = vst [vmem:[#allocation2] sm:$0x7] %v479_v11  ;;  %1193 = vmatprep.subr.mxu1 %v1377_v0 }
  0x2d   : > { %1194 = vmatpush3.msra.mxu1 %v401_v13 }
  0x2e   : > { %1196 = vmatmul.mubr.msk.f32.vlgmr.msra.gmra.mxu1 %vm318_vm1, %v1497_v9  ;;  %1205 = vmatprep.subr.mxu1 %v1377_v0 }
  0x2f   : > { %1209 = vmatprep.mubr.msk.f32.mxu1 %vm1378_vm0, %v1377_v0 }
  0x32   : > { %v487_v14 = vld [vmem:[#allocation2 + $0x8] sm:$0xff] }
  0x33   : > { %v486_v15 = vld [vmem:[#allocation2] sm:$0xff]  ;;  %1199 = vmatpush3.msra.mxu0 %v487_v14  ;;  %569 = vst [vmem:[#allocation2 + $0x4] sm:$0xf0] %v483_v10 }
  0x34   : > { %565 = vst [vmem:[#allocation2 - $0x4] sm:$0x70] %v479_v11  ;;  %1200 = vmatprep.subr.mxu0 %v1377_v0 }
  0x35   : > { %1201 = vmatpush3.msra.mxu0 %v486_v15 }
  0x36   : > { %1203 = vmatmul.mubr.msk.f32.vlgmr.msra.gmra.mxu0 %vm318_vm1, %v1497_v9  ;;  %1212 = vmatprep.subr.mxu0 %v1377_v0 }
  0x37   : > { %1216 = vmatprep.mubr.msk.f32.mxu0 %vm1378_vm0, %v1377_v0 }
  0x3a   : > { %v572_v20 = vld [vmem:[#allocation2 + $0x8] sm:$0xff] }
  0x3b   : > { %v571_v21 = vld [vmem:[#allocation2] sm:$0xff]  ;;  %1206 = vmatpush3.msra.mxu1 %v572_v20  ;;  %654 = vst [vmem:[#allocation2 + $0x8] sm:$0xf] %v653_v18 }
  0x3c   : > { %650 = vst [vmem:[#allocation2] sm:$0x7] %v649_v19  ;;  %1207 = vmatprep.subr.mxu1 %v1377_v0 }
  0x3d   : > { %1208 = vmatpush3.msra.mxu1 %v571_v21 }
  0x3e   : > { %1210 = vmatmul.mubr.msk.f32.vlgmr.msra.gmra.mxu1 %vm318_vm1, %v1497_v9  ;;  %1219 = vmatprep.subr.mxu1 %v1377_v0 }
  0x3f   : > { %1223 = vmatprep.mubr.msk.f32.mxu1 %vm1378_vm0, %v1377_v0 }
  0x42   : > { %v657_v22 = vld [vmem:[#allocation2 + $0x8] sm:$0xff] }
  0x43   : > { %v656_v23 = vld [vmem:[#allocation2] sm:$0xff]  ;;  %1213 = vmatpush3.msra.mxu0 %v657_v22  ;;  %739 = vst [vmem:[#allocation2 + $0x4] sm:$0xf0] %v653_v18 }
  0x44   : > { %735 = vst [vmem:[#allocation2 - $0x4] sm:$0x70] %v649_v19  ;;  %1214 = vmatprep.subr.mxu0 %v1377_v0 }
  0x45   : > { %1215 = vmatpush3.msra.mxu0 %v656_v23 }
  0x46   : > { %1217 = vmatmul.mubr.msk.f32.vlgmr.msra.gmra.mxu0 %vm318_vm1, %v1497_v9  ;;  %1226 = vmatprep.subr.mxu0 %v1377_v0 }
  0x47   : > { %1230 = vmatprep.mubr.msk.f32.mxu0 %vm1378_vm0, %v1377_v0 }
  0x4a   : > { %v742_v26 = vld [vmem:[#allocation2 + $0x8] sm:$0xff] }
  0x4b   : > { %v741_v27 = vld [vmem:[#allocation2] sm:$0xff]  ;;  %1220 = vmatpush3.msra.mxu1 %v742_v26  ;;  %824 = vst [vmem:[#allocation2 + $0x8] sm:$0xf] %v823_v24 }
  0x4c   : > { %820 = vst [vmem:[#allocation2] sm:$0x7] %v819_v25  ;;  %1221 = vmatprep.subr.mxu1 %v1377_v0 }
  0x4d   : > { %1222 = vmatpush3.msra.mxu1 %v741_v27 }
  0x4e   : > { %1224 = vmatmul.mubr.msk.f32.vlgmr.msra.gmra.mxu1 %vm318_vm1, %v1497_v9  ;;  %1233 = vmatprep.subr.mxu1 %v1377_v0 }
  0x4f   : > { %1237 = vmatprep.mubr.msk.f32.mxu1 %vm1378_vm0, %v1377_v0 }
  0x52   : > { %v827_v28 = vld [vmem:[#allocation2 + $0x8] sm:$0xff] }
  0x53   : > { %v826_v29 = vld [vmem:[#allocation2] sm:$0xff]  ;;  %1227 = vmatpush3.msra.mxu0 %v827_v28  ;;  %909 = vst [vmem:[#allocation2 + $0x4] sm:$0xf0] %v823_v24 }
  0x54   : > { %905 = vst [vmem:[#allocation2 - $0x4] sm:$0x70] %v819_v25  ;;  %1228 = vmatprep.subr.mxu0 %v1377_v0 }
  0x55   : > { %1229 = vmatpush3.msra.mxu0 %v826_v29 }
  0x56   : > { %1231 = vmatmul.mubr.msk.f32.vlgmr.msra.gmra.mxu0 %vm318_vm1, %v1497_v9 }
  0x5a   : > { %v912_v30 = vld [vmem:[#allocation2 + $0x8] sm:$0xff] }
  0x5b   : > { %v911_v31 = vld [vmem:[#allocation2] sm:$0xff]  ;;  %1234 = vmatpush3.msra.mxu1 %v912_v30 }
  0x5c   : > { %1235 = vmatprep.subr.mxu1 %v1377_v0 }
  0x5d   : > { %1236 = vmatpush3.msra.mxu1 %v911_v31 }
  0x5e   : > { %1238 = vmatmul.mubr.msk.f32.vlgmr.msra.gmra.mxu1 %vm318_vm1, %v1497_v9 }
  0x93   : > { %v991_v54 = vpop.permute.xlu0 %990 }
  0xe6   : > { %v388_v32 = vpop.f32.mrf.mxu0 }
  0xe8   : > { %v1190_v33 = vpop.f32.mrf.mxu0 }
  0xee   : > { %v472_v34 = vpop.f32.mrf.mxu1 }
  0xef   : > { %v476_v42 = vmax.f32 %v388_v32, %v472_v34 }
  0xf0   : > { %v1197_v35 = vpop.f32.mrf.mxu1 }
  0xf6   : > { %v557_v36 = vpop.f32.mrf.mxu0 }
  0xf7   : > { %v561_v43 = vmax.f32 %v476_v42, %v557_v36 }
  0xf8   : > { %v1204_v37 = vpop.f32.mrf.mxu0 }
  0xfe   : > { %v642_v38 = vpop.f32.mrf.mxu1 }
  0xff   : > { %v646_v46 = vmax.f32 %v561_v43, %v642_v38 }
 0x100   : > { %v1211_v39 = vpop.f32.mrf.mxu1 }
 0x106   : > { %v727_v40 = vpop.f32.mrf.mxu0 }
 0x107   : > { %v731_v47 = vmax.f32 %v646_v46, %v727_v40 }
 0x108   : > { %v1218_v41 = vpop.f32.mrf.mxu0 }
 0x10e   : > { %v812_v44 = vpop.f32.mrf.mxu1 }
 0x10f   : > { %v816_v50 = vmax.f32 %v731_v47, %v812_v44 }
 0x110   : > { %v1225_v45 = vpop.f32.mrf.mxu1 }
 0x116   : > { %v897_v48 = vpop.f32.mrf.mxu0 }
 0x117   : > { %v901_v52 = vmax.f32 %v816_v50, %v897_v48 }
 0x118   : > { %v1232_v49 = vpop.f32.mrf.mxu0 }
 0x11e   : > { %v982_v53 = vpop.f32.mrf.mxu1 }
 0x11f   : > { %v986_v55 = vmax.f32 %v901_v52, %v982_v53 }
 0x120   : > { %v1239_v57 = vpop.f32.mrf.mxu1 }
 0x121   : > { %v993_v58 = vadd.f32 %v991_v54, %v986_v55 }
 0x123   : > { %v996_v59 = vadd.f32 %v995_v56, %v993_v58 }
 0x125   : > { %v997_v60 = vmax.f32 %v996_v59, 0.0 }
 0x127   : > { %998 = vst [vmem:[%s283_s12] sm:$0xf] %v997_v60 }
 0x128   : > { %1312 = shalt.err (!%p1309_p5)
}
 0x129   : > { %s1313_s27 = scalar_lea.hbm %s1012_s15, 64  ;;  %s1317_s8 = scalar_lea.hbm %s1591_s5, 128 }
 0x12a   : > { %p1314_p6 = scmp.ne.s32.totalorder %s1012_s15, %s1313_s27  ;;  %p1318_p10 = scmp.lt.s32.totalorder %s1012_s15, %s1591_s5 }
 0x12b   : > { %p1319_p11 = scmp.lt.s32.totalorder %s1317_s8, %s1313_s27 }
 0x12c   : > { %p1315_p7 = pnand %p1314_p6, %p1451_p4 }
 0x12d   : > { %p1320_p12 = por %p1319_p11, %p1318_p10 }
 0x12e   : > { %p1316_p9 = pneg %p1315_p7 }
 0x130   : > { %p1321_p13 = pnand %p1320_p12, %p1316_p9 }
 0x132   : > { %1324 = shalt.err (!%p1321_p13)
}
 0x133   : > { %1240 = dma.vmem_to_hbm [thread:$0]  (%p1451_p4), %s1015_s9, 64, %s1012_s15, %s1000_s16  }
 0x134 PF: > { %p1246_p0 = scmp.ge.s32.totalorder %s1375_s23, 2  ;;  %s1026_s12 = sand.u32 1, %s1355_s18  }
 0x135   : > { %s1027_s13 = scalar_lea.sflag [#allocation4], %s1026_s12 }
 0x136   : > { %p1243_p1 = pnand %p1246_p0, %p1458_p8 }
 0x138   : > { %p1244_p2 = pneg %p1243_p1 }
 0x13a   : > { %1350 = dma.done.wait (%p1244_p2), %s1027_s13, 64  }
 0x13b   : > { %1352 = vsyncadd (%p1244_p2), %s1027_s13, 4294967232  ;;  %s18_s23 = sadd.s32 1, %s1375_s23   ;;  %s1594_s18 = smov %s1359_s19 }
 0x13c   : > { %p15_p3 = scmp.ge.s32.totalorder %s18_s23, 4   ;;  %s1595_s19 = smov %s1363_s20 }
 0x13d   : > { %s1596_s20 = smov %s1464_s6  ;;  %s1597_s21 = smov %s1371_s22 }
 0x13e   : > { %s1598_s22 = smov %s1600_s26  ;;  %17 = sbr.rel (!%p15_p3) target bundleno = 4 (0x4), region = 95 }
 0x143   :  { %1032 = vsyncpa [#allocation4], 1 }
 0x144   :  { %1034 = vsyncpa [#allocation4 + $0x1], 1 }

</bundles_post_ra>
